<compile_context>
chip_gen: v5e
topology: v5e:2x2
jax: 0.10.0
libtpu: 0.0.40
codegen_flags: <defaults>
</compile_context>

<pallas_src>
from functools import partial

import jax
import jax.numpy as jnp
from jax import lax
from jax.experimental import pallas as pl
from jax.experimental.pallas import tpu as pltpu

_EPS = 1e-12                       # F.normalize default eps
_VMEM_LIMIT = 32 * 1024 * 1024     # scoped-VMEM budget for both kernels


# ---------------------------------------------------------------------------
# Kernel A: row-wise L2 normalization of the node embeddings.
# ---------------------------------------------------------------------------
def _l2_normalize_kernel(x_ref, o_ref):
    x = x_ref[...].astype(jnp.float32)                       # (tile_n, D)
    ss = jnp.sum(x * x, axis=-1, keepdims=True)              # (tile_n, 1)
    # 1 / max(||x||, eps) == rsqrt(max(||x||^2, eps^2)); rsqrt runs on the EUP.
    inv = lax.rsqrt(jnp.maximum(ss, _EPS * _EPS))
    o_ref[...] = (x * inv).astype(o_ref.dtype)


# ---------------------------------------------------------------------------
# Kernel B: per-edge d-weighted affinity score over a tile of edges.
# ---------------------------------------------------------------------------
def _edge_affinity_kernel(dw_ref, eu_ref, ev_ref, out_ref):
    eu = eu_ref[...].astype(jnp.float32)                     # (tile_e, D)
    ev = ev_ref[...].astype(jnp.float32)                     # (tile_e, D)
    prod = eu * ev                                           # (tile_e, D), VPU
    # (1, D) . (tile_e, D)^T -> (1, tile_e): D-reduction on the MXU; the result
    # is lane-dense (scores along the 128-lane axis), so no masked (E, 1)
    # partial stores.  precision=HIGHEST avoids single-pass bf16 truncation.
    score = lax.dot_general(
        dw_ref[...], prod, (((1,), (1,)), ((), ())),
        preferred_element_type=jnp.float32,
        precision=lax.Precision.HIGHEST)
    out_ref[...] = score.astype(out_ref.dtype)


# ---------------------------------------------------------------------------
# Byte-budget-derived tile sizes.
# ---------------------------------------------------------------------------
def _pick_tile_n(N, D, target_bytes=4 << 20, cap=16384):
    # One f32 input block of ~target_bytes; double-buffered in + bf16 out stays
    # well under _VMEM_LIMIT.
    t = target_bytes // (D * 4)
    t = max(16, min(cap, (t // 16) * 16))      # multiple of 16 (bf16 sublanes)
    return N if t >= N else t


def _pick_tile_e(E, D, itemsize, target_bytes=4 << 20, cap=16384):
    # 2 gathered inputs * tile_e * D * itemsize ~= target_bytes per grid step;
    # cap keeps double-buffered inputs + in-kernel f32 temporaries under the
    # 32 MiB scoped-VMEM budget on every generation.
    t = target_bytes // (2 * D * itemsize)
    t = max(128, min(cap, (t // 128) * 128))   # multiple of 128 (lanes)
    return E if t >= E else t


# ---------------------------------------------------------------------------
# Forward pass.
# ---------------------------------------------------------------------------
def local_emb_d_forward(emb, edge_index, d, scale, stage_dtype=jnp.bfloat16):
    """emb (N, D), edge_index (2, E) int, d (D,), scale scalar/(1,) -> (E,) f32.

    stage_dtype: dtype used to stage the normalized embeddings (and therefore
    the gathered (E, D) temporaries) in HBM.  bf16 halves the dominant HBM
    traffic at ~2^-8 relative quantization of the unit-norm embeddings;
    float32 gives bit-accurate results vs. the PyTorch reference.
    """
    N, D = emb.shape
    E = edge_index.shape[1]

    # ---- Kernel A: L2-normalize node embeddings once (dedup vs per-edge) ----
    tile_n = _pick_tile_n(N, D)
    emb_n = pl.pallas_call(
        _l2_normalize_kernel,
        out_shape=jax.ShapeDtypeStruct((N, D), stage_dtype),
        grid=(pl.cdiv(N, tile_n),),
        in_specs=[pl.BlockSpec((tile_n, D), lambda i: (i, 0))],
        out_specs=pl.BlockSpec((tile_n, D), lambda i: (i, 0)),
        compiler_params=pltpu.CompilerParams(
            dimension_semantics=("parallel",),
            vmem_limit_bytes=_VMEM_LIMIT),
    )(emb.astype(jnp.float32))

    # ---- Edge gather (glue, plain JAX / XLA), staged in stage_dtype ----
    # TODO(synk): fuse this gather into Kernel B (VMEM-resident emb_n +
    # scalar-prefetched u/v + in-kernel row gather) to remove the two (E, D)
    # HBM temporaries — the remaining top win per the perf review.
    u = edge_index[0].astype(jnp.int32)
    v = edge_index[1].astype(jnp.int32)
    emb_u = jnp.take(emb_n, u, axis=0)                       # (E, D) stage_dtype
    emb_v = jnp.take(emb_n, v, axis=0)                       # (E, D) stage_dtype

    # Fold scale into d: one resident (1, D) f32 row, no per-edge scalar mul.
    dw = (d.astype(jnp.float32) * jnp.asarray(scale, jnp.float32)).reshape(1, D)

    # ---- Kernel B: per-edge affinity, tiled & pipelined over edges ----
    tile_e = _pick_tile_e(E, D, jnp.dtype(stage_dtype).itemsize)
    out_row = pl.pallas_call(
        _edge_affinity_kernel,
        out_shape=jax.ShapeDtypeStruct((1, E), jnp.float32),
        grid=(pl.cdiv(E, tile_e),),
        in_specs=[
            pl.BlockSpec((1, D), lambda i: (0, 0)),          # dw: resident
            pl.BlockSpec((tile_e, D), lambda i: (i, 0)),     # emb_n[u] tile
            pl.BlockSpec((tile_e, D), lambda i: (i, 0)),     # emb_n[v] tile
        ],
        out_specs=pl.BlockSpec((1, tile_e), lambda i: (0, i)),  # lane-dense row
        compiler_params=pltpu.CompilerParams(
            dimension_semantics=("parallel",),
            vmem_limit_bytes=_VMEM_LIMIT),
    )(dw, emb_u, emb_v)

    return out_row[0]


local_emb_d = jax.jit(local_emb_d_forward, static_argnames=("stage_dtype",))


def local_emb_d_reference(emb, edge_index, d, scale):
    # Plain-JAX mirror of the PyTorch forward (for correctness checking).
    norm = jnp.maximum(jnp.linalg.norm(emb, axis=1, keepdims=True), _EPS)
    emb_n = emb / norm
    u, v = edge_index[0], edge_index[1]
    euw = emb_n[u] @ jnp.diag(d)
    pair_dis = euw @ emb_n[v].T
    return jnp.diag(pair_dis) * jnp.asarray(scale, jnp.float32).reshape(())


if __name__ == "__main__":
    key = jax.random.PRNGKey(0)
    k_emb, k_edge = jax.random.split(key)

    N, D, E = 16, 32, 8  # nodes, hidden dim, edges
    emb = jax.random.normal(k_emb, (N, D), dtype=jnp.float32)
    edge_index = jax.random.randint(k_edge, (2, E), 0, N, dtype=jnp.int32)

    # Parameters, initialized exactly as in local_emb_D.__init__
    d_param = jnp.ones((D,), dtype=jnp.float32)          # torch.ones(n_hidden)
    scale_param = jnp.full((1,), 1.0, dtype=jnp.float32)  # torch.full((1,), 1.0)

    ref = local_emb_d_reference(emb, edge_index, d_param, scale_param)

    # Bit-accurate path (f32 staging) — matches the PyTorch reference tightly.
    out_f32 = local_emb_d(emb, edge_index, d_param, scale_param,
                          stage_dtype=jnp.float32)
    out_f32 = jax.block_until_ready(out_f32)
    assert out_f32.shape == (E,)
    assert jnp.allclose(out_f32, ref, atol=1e-5, rtol=1e-5), (out_f32, ref)

    # Default fast path (bf16 staging of the normalized embeddings): ~2^-8
    # relative quantization of unit-norm values — documented precision tradeoff.
    out = local_emb_d(emb, edge_index, d_param, scale_param)
    out = jax.block_until_ready(out)
    assert out.shape == (E,)
    assert jnp.allclose(out, ref, atol=1e-2, rtol=1e-2), (out, ref)

    print("KERNEL_OK")
</pallas_src>

<mosaic_0001>
module attributes {stable_mosaic.version = 11 : i64} {
  func.func @_l2_normalize_kernel(%arg0: i32, %arg1: memref<16x32xf32, #tpu.memory_space<vmem>>, %arg2: memref<16x32xf32, #tpu.memory_space<vmem>>) attributes {dimension_semantics = [#tpu.dimension_semantics<parallel>], iteration_bounds = array<i64: 1>, scalar_prefetch = 0 : i64, scratch_operands = 0 : i64, tpu.core_type = #tpu.core_type<tc>, window_params = [{transform_indices = @transform_0, window_bounds = array<i64: 16, 32>}, {transform_indices = @transform_1, window_bounds = array<i64: 16, 32>}]} {
    %c0 = arith.constant 0 : index
    %c0_0 = arith.constant 0 : index
    %0 = vector.load %arg1[%c0, %c0_0] : memref<16x32xf32, #tpu.memory_space<vmem>>, vector<16x32xf32>
    %1 = arith.mulf %0, %0 : vector<16x32xf32>
    %cst = arith.constant dense<0.000000e+00> : vector<16xf32>
    %2 = vector.multi_reduction <add>, %1, %cst [1] : vector<16x32xf32> to vector<16xf32>
    %3 = vector.shape_cast %2 : vector<16xf32> to vector<16x1xf32>
    %cst_1 = arith.constant 1.000000e-24 : f32
    %4 = vector.broadcast %cst_1 : f32 to vector<16x1xf32>
    %5 = arith.maximumf %3, %4 : vector<16x1xf32>
    %6 = math.rsqrt %5 : vector<16x1xf32>
    %7 = vector.broadcast %6 : vector<16x1xf32> to vector<16x32xf32>
    %8 = arith.mulf %0, %7 : vector<16x32xf32>
    %c0_2 = arith.constant 0 : index
    %c0_3 = arith.constant 0 : index
    %9 = vector.load %arg2[%c0_2, %c0_3] : memref<16x32xf32, #tpu.memory_space<vmem>>, vector<16x32xf32>
    tpu.vector_store %arg2[%c0_2, %c0_3], %8 {strides = array<i32>} : memref<16x32xf32, #tpu.memory_space<vmem>>, vector<16x32xf32>,
    return
  }
  func.func @transform_0(%arg0: i32) -> (i32, i32) {
    %c0_i32 = arith.constant 0 : i32
    %c0_i32_0 = arith.constant 0 : i32
    return %arg0, %c0_i32 : i32, i32
  }
  func.func @transform_1(%arg0: i32) -> (i32, i32) {
    %c0_i32 = arith.constant 0 : i32
    %c0_i32_0 = arith.constant 0 : i32
    return %arg0, %c0_i32 : i32, i32
  }
}

module attributes {stable_mosaic.version = 11 : i64} {
  func.func @_edge_affinity_kernel(%arg0: i32, %arg1: memref<1x32xf32, #tpu.memory_space<vmem>>, %arg2: memref<8x32xf32, #tpu.memory_space<vmem>>, %arg3: memref<8x32xf32, #tpu.memory_space<vmem>>, %arg4: memref<1x8xf32, #tpu.memory_space<vmem>>) attributes {dimension_semantics = [#tpu.dimension_semantics<parallel>], iteration_bounds = array<i64: 1>, scalar_prefetch = 0 : i64, scratch_operands = 0 : i64, tpu.core_type = #tpu.core_type<tc>, window_params = [{pipeline_mode = #tpu.pipeline_mode<synchronous>, transform_indices = @transform_0, window_bounds = array<i64: 1, 32>}, {transform_indices = @transform_1, window_bounds = array<i64: 8, 32>}, {transform_indices = @transform_2, window_bounds = array<i64: 8, 32>}, {transform_indices = @transform_3, window_bounds = array<i64: 1, 8>}]} {
    %c0 = arith.constant 0 : index
    %c0_0 = arith.constant 0 : index
    %0 = vector.load %arg2[%c0, %c0_0] : memref<8x32xf32, #tpu.memory_space<vmem>>, vector<8x32xf32>
    %c0_1 = arith.constant 0 : index
    %c0_2 = arith.constant 0 : index
    %1 = vector.load %arg3[%c0_1, %c0_2] : memref<8x32xf32, #tpu.memory_space<vmem>>, vector<8x32xf32>
    %2 = arith.mulf %0, %1 : vector<8x32xf32>
    %c0_3 = arith.constant 0 : index
    %c0_4 = arith.constant 0 : index
    %3 = vector.load %arg1[%c0_3, %c0_4] : memref<1x32xf32, #tpu.memory_space<vmem>>, vector<1x32xf32>
    %cst = arith.constant dense<0.000000e+00> : vector<1x8xf32>
    %4 = tpu.matmul %3, %2, %cst {dimension_numbers = #tpu.dot_dimension_numbers<[1], [1], [0], [0], [0, 0, 1, 0], [], []>, precision = #tpu.contract_precision<fp32>} : vector<1x32xf32>, vector<8x32xf32>, vector<1x8xf32> -> vector<1x8xf32>
    %c0_5 = arith.constant 0 : index
    %c0_6 = arith.constant 0 : index
    %5 = vector.load %arg4[%c0_5, %c0_6] : memref<1x8xf32, #tpu.memory_space<vmem>>, vector<1x8xf32>
    tpu.vector_store %arg4[%c0_5, %c0_6], %4 {strides = array<i32>} : memref<1x8xf32, #tpu.memory_space<vmem>>, vector<1x8xf32>,
    return
  }
  func.func @transform_0(%arg0: i32) -> (i32, i32) {
    %c0_i32 = arith.constant 0 : i32
    %c0_i32_0 = arith.constant 0 : i32
    %c0_i32_1 = arith.constant 0 : i32
    return %c0_i32, %c0_i32_0 : i32, i32
  }
  func.func @transform_1(%arg0: i32) -> (i32, i32) {
    %c0_i32 = arith.constant 0 : i32
    %c0_i32_0 = arith.constant 0 : i32
    return %arg0, %c0_i32 : i32, i32
  }
  func.func @transform_2(%arg0: i32) -> (i32, i32) {
    %c0_i32 = arith.constant 0 : i32
    %c0_i32_0 = arith.constant 0 : i32
    return %arg0, %c0_i32 : i32, i32
  }
  func.func @transform_3(%arg0: i32) -> (i32, i32) {
    %c0_i32 = arith.constant 0 : i32
    %c0_i32_0 = arith.constant 0 : i32
    return %c0_i32, %arg0 : i32, i32
  }
}

</mosaic_0001>

<bundles_post_ra>
// kernel: local_emb_d_forward.2
= control target key start
LH: loop header
LB: loop body
LE: loop exit
PB: predicated region body
PF: predicated region fallthrough
CT: control target
= control target key end

     0   :  { %6 = vsyncpa [#allocation3], 0  ;;  %s99_s9 = smov [#allocation2]   ;;  %s100_s11 = smov 128   ;;  %s125_s0 = inlined_call_operand.hbm [shape: f32[16,32], index: 0, kind: input, shape index: {}]   ;;  %s126_s1 = inlined_call_operand.vmem [shape: f32[16,32], index: 1, kind: output, shape index: {}]  }
   0x1   :  { %s11_s8 = sshll.u32 %s125_s0, 4  ;;  %s13_s10 = sshll.u32 %s99_s9, 4  ;;  %s12_s8 = int_to_ptr.hbm [resolvable:$true] %s11_s8  ;;  %s14_s10 = int_to_ptr.vmem [resolvable:$true] %s13_s10 }
   0x2   :  { %s101_s12 = smov 8  }
   0x3   :  { %19 = dma.hbm_to_vmem [thread:$0]  %s12_s8, 256, %s14_s10, [#allocation3], %s100_s11, %s100_s11, %s101_s12  }
   0x4   :  { %97 = dma.done.wait [#allocation3], 256  }
   0x5   :  { %98 = vsyncadd [#allocation3], 4294967040  ;;  %v24_v0 = vld [vmem:[#allocation2] sm:$0xff]  ;;  %vm28_vm0 = vcmask 261120   ;;  %v25_v2 = vld [vmem:[#allocation2 + $0x8] sm:$0xff] }
   0x6   :  { %v26_v1 = vmul.f32 %v24_v0, %v24_v0  ;;  %v27_v4 = vmul.f32 %v25_v2, %v25_v2 }
   0x8   :  { %v29_v3 = vsel %vm28_vm0, %v26_v1, 0.0  ;;  %v32_v5 = vsel %vm28_vm0, %v27_v4, 0.0 }
   0x9   :  { %30 = vadd.xlane.f32.xlu0 %v29_v3 }
  0x11   :  { %33 = vadd.xlane.f32.xlu0 %v32_v5 }
  0x7c   :  { %v31_v6 = vpop.xlane.xlu0 %30 }
  0x7d   :  { %v35_v7 = vmax.f32 %v31_v6, 1e-24 }
  0x7f   :  { %69 = vrsqrt.f32 %v35_v7  ;;  %vm43_vm2 = vweird.f32 %v35_v7 }
  0x84   :  { %v34_v8 = vpop.xlane.xlu0 %33 }
  0x85   :  { %v70_v9 = vpop.eup %69  ;;  %v36_v10 = vmax.f32 %v34_v8, 1e-24 }
  0x86   :  { %v38_v11 = vmul.f32 %v70_v9, %v35_v7  ;;  %vm44_vm1 = vweird.f32 %v70_v9 }
  0x87   :  { %71 = vrsqrt.f32 %v36_v10  ;;  %vm45_vm3 = vmor %vm43_vm2, %vm44_vm1  ;;  %vm53_vm5 = vweird.f32 %v36_v10 }
  0x88   :  { %v39_v12 = vmul.f32 %v70_v9, %v38_v11 }
  0x8a   :  { %v40_v13 = vmul.f32 0.5, %v39_v12 }
  0x8c   :  { %v41_v14 = vsub.f32 1.5, %v40_v13 }
  0x8d   :  { %v72_v15 = vpop.eup %71 }
  0x8e   :  { %v42_v16 = vmul.f32 %v70_v9, %v41_v14  ;;  %v48_v17 = vmul.f32 %v72_v15, %v36_v10  ;;  %vm54_vm4 = vweird.f32 %v72_v15 }
  0x8f   :  { %vm55_vm6 = vmor %vm53_vm5, %vm54_vm4 }
  0x90   :  { %v46_v18 = vsel %vm45_vm3, %v70_v9, %v42_v16  ;;  %v49_v19 = vmul.f32 %v72_v15, %v48_v17 }
  0x91   :  { %v57_v20 = vmul.f32 %v46_v18, %v24_v0 }
  0x92   :  { %v50_v21 = vmul.f32 0.5, %v49_v19 }
  0x93   :  { %59 = vst.msk [vmem:[%s126_s1] sm:$0xff] %vm28_vm0, %v57_v20 }
  0x94   :  { %v51_v22 = vsub.f32 1.5, %v50_v21 }
  0x96   :  { %v52_v23 = vmul.f32 %v72_v15, %v51_v22 }
  0x98   :  { %v56_v24 = vsel %vm55_vm6, %v72_v15, %v52_v23 }
  0x99   :  { %v58_v25 = vmul.f32 %v56_v24, %v25_v2 }
  0x9b   :  { %60 = vst.msk [vmem:[%s126_s1 + $0x8] sm:$0xff] %vm28_vm0, %v58_v25 }
  0x9c   :  { %65 = vsyncpa [#allocation3], 1 }

// kernel: local_emb_d_forward.3
= control target key start
LH: loop header
LB: loop body
LE: loop exit
PB: predicated region body
PF: predicated region fallthrough
CT: control target
= control target key end

     0   :  { %vm19_vm0 = vcmask 261120   ;;  %s250_s0 = inlined_call_operand.vmem [shape: f32[1,32], index: 0, kind: input, shape index: {}]   ;;  %s251_s1 = inlined_call_operand.vmem [shape: f32[8,32], index: 1, kind: input, shape index: {}]   ;;  %s252_s2 = inlined_call_operand.vmem [shape: f32[8,32], index: 2, kind: input, shape index: {}]   ;;  %s253_s3 = inlined_call_operand.hbm [shape: f32[1,8], index: 3, kind: output, shape index: {}]  }
   0x1   :  { %v15_v0 = vld [vmem:[%s251_s1] sm:$0xff] }
   0x2   :  { %v16_v1 = vld [vmem:[%s252_s2] sm:$0xff] }
   0x3   :  { %v18_v2 = vld [vmem:[%s250_s0] sm:$0x1]  ;;  %v17_v3 = vmul.f32 %v16_v1, %v15_v0 }
   0x4   :  { %v21_v4 = vsel %vm19_vm0, %v18_v2, 0 }
   0x5   :  { %8 = vsyncpa [#allocation3], 0  ;;  %v43_v5 = vand.u32 4294901760, %v21_v4  ;;  %v24_v6 = vsel %vm19_vm0, %v17_v3, 0  ;;  %s217_s0 = smov [#allocation2]   ;;  %s181_s19 = sshll.u32 %s253_s3, 4  ;;  %s182_s19 = int_to_ptr.hbm [resolvable:$true] %s181_s19 }
   0x6   :  { %v41_v7 = vand.u32 4294901760, %v24_v6  ;;  %s179_s1 = sshll.u32 %s217_s0, 4  ;;  %vm172_vm1 = vcmask 57344   ;;  %s180_s1 = int_to_ptr.vmem [resolvable:$true] %s179_s1 }
   0x7   :  { %v44_v8 = vsub.f32 %v21_v4, %v43_v5 }
   0x8   :  { %v68_v9 = vsub.f32 %v24_v6, %v41_v7  ;;  %42 = vmatpush.xpose.msra.mxu0 %v41_v7  ;;  %118 = vmatpush.xpose.msra.mxu3 %v41_v7 }
   0x9   :  { %v45_v10 = vand.u32 4294901760, %v44_v8 }
   0xa   :  { %95 = vmatpush.xpose.msra.mxu2 %v68_v9  ;;  %v69_v11 = vand.u32 4294901760, %v68_v9 }
   0xb   :  { %v46_v12 = vsub.f32 %v44_v8, %v45_v10  ;;  %122 = vmatmul.f32.vlgmr.msra.gmra.mxu3 %v45_v10 }
   0xc   :  { %v70_v13 = vsub.f32 %v68_v9, %v69_v11  ;;  %144 = vmatpush.xpose.msrb.mxu0 %v69_v11 }
   0xd   :  { %v47_v14 = vand.u32 4294901760, %v46_v12  ;;  %98 = vmatmul.f32.vlgmr.msra.gmra.mxu2 %v44_v8 }
   0xe   :  { %v71_v15 = vand.u32 4294901760, %v70_v13 }
   0xf   :  { %48 = vmatmul.f32.vlgmr.msra.gmra.mxu0 %v47_v14 }
  0x10   :  { %72 = vmatpush.xpose.msra.mxu1 %v71_v15 }
  0x13   :  { %74 = vmatmul.f32.vlgmr.msra.gmra.mxu1 %v43_v5 }
  0x14   :  { %166 = vmatpush.xpose.msrb.mxu1 %v41_v7 }
  0x17   :  { %146 = vmatmul.f32.vlgmr.msrb.gmra.mxu0 %v43_v5 }
  0x1b   :  { %168 = vmatmul.f32.vlgmr.msrb.gmra.mxu1 %v43_v5 }
  0x8c   :  { %v49_v16 = vpop.f32.mrf.mxu0 }
  0x8e   :  { %v123_v20 = vpop.f32.mrf.mxu3 }
  0x90   :  { %v75_v17 = vpop.f32.mrf.mxu1  ;;  %v99_v18 = vpop.f32.mrf.mxu2 }
  0x91   :  { %v76_v19 = vadd.f32 %v75_v17, %v49_v16 }
  0x93   :  { %v100_v21 = vadd.f32 %v99_v18, %v76_v19 }
  0x94   :  { %v147_v22 = vpop.f32.mrf.mxu0 }
  0x95   :  { %v124_v23 = vadd.f32 %v123_v20, %v100_v21 }
  0x97   :  { %v148_v24 = vadd.f32 %v147_v22, %v124_v23 }
  0x98   :  { %v169_v25 = vpop.f32.mrf.mxu1 }
  0x99   :  { %v170_v26 = vadd.f32 %v169_v25, %v148_v24 }
  0x9b   :  { %173 = vst.msk [vmem:[#allocation2] sm:$0x1] %vm172_vm1, %v170_v26 }
  0x9c   :  { %184 = dma.vmem_to_hbm [thread:$0]  %s180_s1, 16, %s182_s19, [#allocation3]  }
  0x9d   :  { %215 = dma.done.wait [#allocation3], 16  }
  0x9e   :  { %216 = vsyncadd [#allocation3], 4294967280 }
  0x9f   :  { %189 = vsyncpa [#allocation3], 1 }

</bundles_post_ra>
